<compile_context>
chip_gen: v7x
topology: tpu7x:2x2x1
jax: 0.10.0
libtpu: 0.0.40
codegen_flags: <defaults>
</compile_context>

<pallas_src>
import functools

import jax
import jax.numpy as jnp
from jax.experimental import pallas as pl
from jax.experimental.pallas import tpu as pltpu


# ---------------------------------------------------------------------------
# Generation-aware defaults (VMEM scratch budget + TensorCore count per chip).
# ---------------------------------------------------------------------------
def _tpu_defaults():
    """Return (vmem_limit_bytes, num_tensorcores) for the local TPU generation."""
    try:
        kind = jax.devices()[0].device_kind.lower()
    except Exception:
        return 40 * 1024 * 1024, 1
    if "v7" in kind:                               # 64 MiB VMEM per TC, 2 TCs/chip
        return 44 * 1024 * 1024, 2
    if "v6" in kind:                               # 128 MiB VMEM, 1 TC
        return 96 * 1024 * 1024, 1
    if "v5" in kind:
        if "lite" in kind or "v5e" in kind:        # v5e: 128 MiB, 1 TC
            return 96 * 1024 * 1024, 1
        return 96 * 1024 * 1024, 2                 # v5p megacore
    if "v4" in kind:
        return 96 * 1024 * 1024, 2                 # v4 megacore
    return 40 * 1024 * 1024, 1                     # conservative fallback


# ---------------------------------------------------------------------------
# Gate helper: sigmoid(Conv1d_k(mean)) from per-channel sums, shape (..., C, 1).
# ---------------------------------------------------------------------------
def _gate_from_sum(col_sum, w_ref, *, k_size: int, inv_hw: float):
    """Conv1d(1,1,k, padding=(k-1)//2, bias=False) across channels as k shifted FMAs.

    col_sum: (..., C, 1) f32 per-channel sums. Returns sigmoid gate, (..., C, 1) f32.
    """
    C = col_sum.shape[-2]
    pad = (k_size - 1) // 2
    mean = col_sum * jnp.float32(inv_hw)
    if pad > 0:
        zpad = jnp.zeros(col_sum.shape[:-2] + (pad, 1), jnp.float32)
        mean_pad = jnp.concatenate([zpad, mean, zpad], axis=-2)
    else:
        mean_pad = mean
    lead = (slice(None),) * (mean_pad.ndim - 2)
    z = jnp.zeros_like(mean)
    for t in range(k_size):                         # static & tiny (k ~ 3..9)
        z = z + w_ref[t] * mean_pad[lead + (slice(t, t + C), slice(None))]
    return jax.nn.sigmoid(z)


# ---------------------------------------------------------------------------
# Fused single-pass kernel: TB batch rows of (C, HW) per grid step (1R + 1W of x).
# ---------------------------------------------------------------------------
def _eca_fused_kernel(w_ref, x_ref, o_ref, *, k_size: int, hw: int):
    x = x_ref[...]                                                     # (TB, C, HW)
    col_sum = jnp.sum(x, axis=-1, keepdims=True, dtype=jnp.float32)    # (TB, C, 1) f32
    gate = _gate_from_sum(col_sum, w_ref, k_size=k_size, inv_hw=1.0 / hw)
    o_ref[...] = x * gate.astype(x.dtype)                              # broadcast over HW


# ---------------------------------------------------------------------------
# Two-pass path, pass 1: per-(batch, split) partial channel sums over HW tiles.
# Grid (B, nsplit, n_inner): b/s parallel, j (reduction) arbitrary & innermost.
# ---------------------------------------------------------------------------
def _eca_partial_sum_kernel(x_ref, psum_ref, *, hw: int, thw: int, n_inner: int):
    s = pl.program_id(1)                            # split index (parallel)
    j = pl.program_id(2)                            # HW tile within the split
    tile_idx = s * n_inner + j                      # global HW-tile index (may overflow)

    @pl.when(j == 0)
    def _():
        psum_ref[...] = jnp.zeros_like(psum_ref)

    x = x_ref[0]                                    # (C, thw)
    n_full = hw // thw                              # tiles with no spatial padding

    @pl.when(tile_idx < n_full)                     # interior tiles: no mask work at all
    def _():
        psum_ref[0, 0] = psum_ref[0, 0] + jnp.sum(
            x, axis=-1, keepdims=True, dtype=jnp.float32)

    if hw % thw != 0:                               # emitted only if a partial tile exists
        @pl.when(tile_idx == n_full)                # last (partial) tile: mask the tail
        def _():
            lane = jax.lax.broadcasted_iota(jnp.int32, x.shape, 1)
            valid = (tile_idx * thw + lane) < hw
            psum_ref[0, 0] = psum_ref[0, 0] + jnp.sum(
                jnp.where(valid, x, jnp.zeros_like(x)),
                axis=-1, keepdims=True, dtype=jnp.float32)
    # Overflow tiles of an uneven split (tile_idx past the last real tile) are skipped
    # by both branches and contribute zero (their input block index is clamped).


# ---------------------------------------------------------------------------
# Two-pass path, pass 2: combine partial sums -> gate (tiny, hidden under the DMA),
# then broadcast-multiply. Both grid axes parallel (feeds both cores even for B==1).
# ---------------------------------------------------------------------------
def _eca_scale_kernel(w_ref, psum_ref, x_ref, o_ref, *, k_size: int, hw: int):
    x = x_ref[0]                                    # (C, thw)
    col_sum = jnp.sum(psum_ref[0], axis=0)          # (nsplit, C, 1) -> (C, 1) f32
    gate = _gate_from_sum(col_sum, w_ref, k_size=k_size, inv_hw=1.0 / hw)
    o_ref[0] = x * gate.astype(x.dtype)             # gate broadcast over lanes


# ---------------------------------------------------------------------------
# Wrapper
# ---------------------------------------------------------------------------
def eca_forward(x, conv_w, k_size=3, *,
                vmem_limit_bytes=None, num_cores=None,
                max_fused_block_bytes=None, max_tile_bytes=None):
    """x: (B, C, H, W) NCHW.  conv_w: Conv1d(1, 1, k_size) weight (no bias)."""
    assert k_size % 2 == 1, "ECA uses odd k_size (symmetric zero padding)"
    B, C, H, W = x.shape
    HW = H * W
    xf = x.reshape(B, C, HW)
    w1 = conv_w.reshape(k_size).astype(jnp.float32)     # 1-D SMEM: 16 B, no [8,128] pad
    itemsize = jnp.dtype(x.dtype).itemsize
    slab_bytes = C * HW * itemsize

    auto_vmem, auto_cores = _tpu_defaults()
    if vmem_limit_bytes is None:
        vmem_limit_bytes = auto_vmem
    if num_cores is None:
        num_cores = auto_cores

    # Budget from the real pipelining working set, not a flat constant.
    reserve = max(4 * 1024 * 1024, vmem_limit_bytes // 8)
    budget = max(vmem_limit_bytes - reserve, 1 * 1024 * 1024)
    if max_fused_block_bytes is None:
        fused_denom = 4 + -(-4 // itemsize)     # 2x in + 2x out + worst-case f32 temp
        max_fused_block_bytes = budget // fused_denom
    if max_tile_bytes is None:
        max_tile_bytes = budget // 6            # 3x in (Buffered) + 2x out + product temp

    fused_fits = slab_bytes <= max_fused_block_bytes
    # Core-aware dispatch: fused grid=(B//TB,) starves a core when B < num_cores;
    # the two-pass (B, n_hw) parallel scale pass beats the fused path's 1.5x lower
    # HBM traffic once the tensor is non-trivial.
    total_bytes = B * slab_bytes
    multicore_starved = (num_cores > 1 and B < num_cores and HW >= 2 * 128
                         and total_bytes >= 4 * 1024 * 1024)

    if fused_fits and not multicore_starved:
        # ---- Fused single pass: x read and written exactly once (1R + 1W). ----
        # Batch tiny slabs TB-per-step to amortize per-step overhead; the extra cap
        # bounds the sublane-padded (TB, C, 1) gate temporaries in VMEM.
        tb_target = min(max_fused_block_bytes, 2 * 1024 * 1024)
        tb_temp_cap = max(1, (8 * 1024 * 1024) // (32768 * -(-C // 8)))
        tb_max = min(B, max(1, tb_target // max(slab_bytes, 1)), tb_temp_cap)
        tb = 1
        for d in range(tb_max, 0, -1):          # largest divisor of B <= tb_max
            if B % d == 0:
                tb = d
                break
        out = pl.pallas_call(
            functools.partial(_eca_fused_kernel, k_size=k_size, hw=HW),
            out_shape=jax.ShapeDtypeStruct((B, C, HW), x.dtype),
            grid_spec=pltpu.PrefetchScalarGridSpec(
                num_scalar_prefetch=0,
                grid=(B // tb,),
                in_specs=[
                    pl.BlockSpec(memory_space=pltpu.MemorySpace.SMEM),   # conv weights
                    pl.BlockSpec((tb, C, HW), lambda i: (i, 0, 0)),
                ],
                out_specs=pl.BlockSpec((tb, C, HW), lambda i: (i, 0, 0)),
            ),
            compiler_params=pltpu.CompilerParams(
                dimension_semantics=("parallel",),
                vmem_limit_bytes=vmem_limit_bytes),
        )(w1, xf)
        return out.reshape(B, C, H, W)

    # ---- Tiled two-pass path (big slabs, or small-B on multi-core chips). ----
    # Lane tile: multiple of 128, sized from pass 2's ~6x working set.
    # NOTE: the channel axis is intentionally not tiled (ECA channel counts are far
    # below the point where a single (C, 128) column would bust the budget).
    thw = max(128, (max_tile_bytes // (C * itemsize)) // 128 * 128)
    if B < num_cores:
        # Guarantee >= num_cores HW tiles so both the scale pass and the split
        # reduction have work on every core even when B == 1.
        thw = min(thw, max(128, (HW // num_cores) // 128 * 128))
    thw = min(thw, HW)
    n_hw = pl.cdiv(HW, thw)

    nsplit = num_cores if (B < num_cores and n_hw >= num_cores) else 1
    n_inner = pl.cdiv(n_hw, nsplit)

    if nsplit == 1:
        x_map1 = lambda b, s, j: (b, 0, j)
    else:
        # Uneven splits revisit (and fully mask) the last tile instead of reading OOB.
        x_map1 = lambda b, s, j: (b, 0, jnp.minimum(s * n_inner + j, n_hw - 1))

    # Pass 1: per-(batch, split) partial channel sums over HW tiles.
    psum = pl.pallas_call(
        functools.partial(_eca_partial_sum_kernel, hw=HW, thw=thw, n_inner=n_inner),
        out_shape=jax.ShapeDtypeStruct((B, nsplit, C, 1), jnp.float32),
        grid_spec=pltpu.PrefetchScalarGridSpec(
            num_scalar_prefetch=0,
            grid=(B, nsplit, n_inner),
            in_specs=[pl.BlockSpec((1, C, thw), x_map1)],
            out_specs=pl.BlockSpec((1, 1, C, 1), lambda b, s, j: (b, s, 0, 0)),
        ),
        compiler_params=pltpu.CompilerParams(
            dimension_semantics=("parallel", "parallel", "arbitrary"),
            vmem_limit_bytes=vmem_limit_bytes),
    )(xf)

    # Pass 2: gate + broadcast multiply; deeper buffering on the x stream hides DMA
    # edges (most useful on v5e). Falls back cleanly if pipeline_mode is unsupported.
    def _scale_pass(buffer_depth):
        if buffer_depth is None:
            x_spec = pl.BlockSpec((1, C, thw), lambda b, j: (b, 0, j))
        else:
            x_spec = pl.BlockSpec((1, C, thw), lambda b, j: (b, 0, j),
                                  pipeline_mode=pl.Buffered(buffer_depth))
        return pl.pallas_call(
            functools.partial(_eca_scale_kernel, k_size=k_size, hw=HW),
            out_shape=jax.ShapeDtypeStruct((B, C, HW), x.dtype),
            grid_spec=pltpu.PrefetchScalarGridSpec(
                num_scalar_prefetch=0,
                grid=(B, n_hw),
                in_specs=[
                    pl.BlockSpec(memory_space=pltpu.MemorySpace.SMEM),   # conv weights
                    pl.BlockSpec((1, nsplit, C, 1), lambda b, j: (b, 0, 0, 0)),
                    x_spec,
                ],
                out_specs=pl.BlockSpec((1, C, thw), lambda b, j: (b, 0, j)),
            ),
            compiler_params=pltpu.CompilerParams(
                dimension_semantics=("parallel", "parallel"),
                vmem_limit_bytes=vmem_limit_bytes),
        )(w1, psum, xf)

    try:
        out = _scale_pass(3)
    except Exception:
        out = _scale_pass(None)
    return out.reshape(B, C, H, W)


def eca_reference(x, conv_w, k_size=3):
    """Plain-JAX reference matching the PyTorch eca_layer forward."""
    B, C, H, W = x.shape
    pad = (k_size - 1) // 2
    w = conv_w.reshape(k_size)
    y = x.mean(axis=(2, 3))                                     # (B, C)
    y_pad = jnp.pad(y, ((0, 0), (pad, pad)))
    z = sum(w[t] * y_pad[:, t:t + C] for t in range(k_size))    # (B, C)
    s = jax.nn.sigmoid(z)
    return x * s[:, :, None, None]


if __name__ == "__main__":
    key = jax.random.PRNGKey(0)
    kx1, kx2, kx3, kx4, kw = jax.random.split(key, 5)

    k_size = 3
    # Conv1d(1, 1, k_size, bias=False) weight shape: (out_ch=1, in_ch=1, k_size)
    conv_w = jax.random.normal(kw, (1, 1, k_size), dtype=jnp.float32) * 0.5

    # Case 1: fused single-pass path (auto dispatch); TB>1 batches the tiny slabs.
    x1 = jax.random.normal(kx1, (2, 8, 16, 16), dtype=jnp.float32)
    o1 = jax.block_until_ready(eca_forward(x1, conv_w, k_size=k_size))
    r1 = eca_reference(x1, conv_w, k_size=k_size)
    assert o1.shape == x1.shape
    assert jnp.allclose(o1, r1, atol=1e-5, rtol=1e-5), "fused path mismatch"

    # Case 2: forced tiled two-pass path, single reduction split (nsplit=1),
    # 128-lane tiles with a masked remainder tile (HW=144).
    x2 = jax.random.normal(kx2, (2, 8, 12, 12), dtype=jnp.float32)
    o2 = jax.block_until_ready(eca_forward(
        x2, conv_w, k_size=k_size,
        max_fused_block_bytes=1, max_tile_bytes=4096, num_cores=1))
    r2 = eca_reference(x2, conv_w, k_size=k_size)
    assert jnp.allclose(o2, r2, atol=1e-5, rtol=1e-5), "two-pass (nsplit=1) mismatch"

    # Case 3: forced tiled two-pass path with the B==1 multi-core reduction split
    # (nsplit=2): exercises full, partial (masked) and overflow (skipped) tiles.
    x3 = jax.random.normal(kx3, (1, 8, 12, 24), dtype=jnp.float32)
    o3 = jax.block_until_ready(eca_forward(
        x3, conv_w, k_size=k_size,
        max_fused_block_bytes=1, max_tile_bytes=4096, num_cores=2))
    r3 = eca_reference(x3, conv_w, k_size=k_size)
    assert jnp.allclose(o3, r3, atol=1e-5, rtol=1e-5), "two-pass (nsplit=2) mismatch"

    # Case 4: bf16 activations through the fused path (sums/gate stay in f32).
    x4 = jax.random.normal(kx4, (2, 8, 16, 16), dtype=jnp.float32).astype(jnp.bfloat16)
    o4 = jax.block_until_ready(eca_forward(x4, conv_w, k_size=k_size))
    r4 = eca_reference(x4.astype(jnp.float32), conv_w, k_size=k_size)
    assert jnp.allclose(o4.astype(jnp.float32), r4, atol=5e-2, rtol=5e-2), "bf16 mismatch"

    print("KERNEL_OK")
</pallas_src>

<mosaic_0001>
module attributes {stable_mosaic.version = 11 : i64} {
  func.func @_eca_fused_kernel(%arg0: i32, %arg1: memref<3xf32, #tpu.memory_space<smem>>, %arg2: memref<2x8x256xf32, #tpu.memory_space<vmem>>, %arg3: memref<2x8x256xf32, #tpu.memory_space<vmem>>) attributes {dimension_semantics = [#tpu.dimension_semantics<parallel>], iteration_bounds = array<i64: 1>, scalar_prefetch = 0 : i64, scratch_operands = 0 : i64, tpu.core_type = #tpu.core_type<tc>, window_params = [{transform_indices = @transform_0, window_bounds = array<i64: 3>}, {transform_indices = @transform_1, window_bounds = array<i64: 2, 8, 256>}, {transform_indices = @transform_2, window_bounds = array<i64: 2, 8, 256>}]} {
    %c0 = arith.constant 0 : index
    %c0_0 = arith.constant 0 : index
    %c0_1 = arith.constant 0 : index
    %0 = vector.load %arg2[%c0, %c0_0, %c0_1] : memref<2x8x256xf32, #tpu.memory_space<vmem>>, vector<2x8x256xf32>
    %cst = arith.constant dense<0.000000e+00> : vector<2x8xf32>
    %1 = vector.multi_reduction <add>, %0, %cst [2] : vector<2x8x256xf32> to vector<2x8xf32>
    %2 = vector.shape_cast %1 : vector<2x8xf32> to vector<2x8x1xf32>
    %cst_2 = arith.constant 3.906250e-03 : f32
    %3 = vector.broadcast %cst_2 : f32 to vector<2x8x1xf32>
    %4 = arith.mulf %2, %3 : vector<2x8x1xf32>
    %cst_3 = arith.constant 0.000000e+00 : f32
    %5 = vector.broadcast %cst_3 : f32 to vector<2x1x1xf32>
    %6 = tpu.concatenate %5, %4, %5 in 1 : vector<2x1x1xf32>, vector<2x8x1xf32>, vector<2x1x1xf32> -> vector<2x10x1xf32>
    %cst_4 = arith.constant 0.000000e+00 : f32
    %7 = vector.broadcast %cst_4 : f32 to vector<2x8x1xf32>
    %c0_5 = arith.constant 0 : index
    %8 = memref.load %arg1[%c0_5] : memref<3xf32, #tpu.memory_space<smem>>
    %9 = vector.extract_strided_slice %6 {offsets = [0, 0, 0], sizes = [2, 8, 1], strides = [1, 1, 1]} : vector<2x10x1xf32> to vector<2x8x1xf32>
    %10 = vector.broadcast %8 : f32 to vector<2x8x1xf32>
    %11 = arith.mulf %10, %9 : vector<2x8x1xf32>
    %12 = arith.addf %7, %11 : vector<2x8x1xf32>
    %c1 = arith.constant 1 : index
    %13 = memref.load %arg1[%c1] : memref<3xf32, #tpu.memory_space<smem>>
    %14 = vector.extract_strided_slice %6 {offsets = [0, 1, 0], sizes = [2, 8, 1], strides = [1, 1, 1]} : vector<2x10x1xf32> to vector<2x8x1xf32>
    %15 = vector.broadcast %13 : f32 to vector<2x8x1xf32>
    %16 = arith.mulf %15, %14 : vector<2x8x1xf32>
    %17 = arith.addf %12, %16 : vector<2x8x1xf32>
    %c2 = arith.constant 2 : index
    %18 = memref.load %arg1[%c2] : memref<3xf32, #tpu.memory_space<smem>>
    %19 = vector.extract_strided_slice %6 {offsets = [0, 2, 0], sizes = [2, 8, 1], strides = [1, 1, 1]} : vector<2x10x1xf32> to vector<2x8x1xf32>
    %20 = vector.broadcast %18 : f32 to vector<2x8x1xf32>
    %21 = arith.mulf %20, %19 : vector<2x8x1xf32>
    %22 = arith.addf %17, %21 : vector<2x8x1xf32>
    %23 = arith.negf %22 : vector<2x8x1xf32>
    %24 = math.exp %23 : vector<2x8x1xf32>
    %cst_6 = arith.constant 1.000000e+00 : f32
    %25 = vector.broadcast %cst_6 : f32 to vector<2x8x1xf32>
    %26 = arith.addf %25, %24 : vector<2x8x1xf32>
    %27 = arith.divf %25, %26 : vector<2x8x1xf32>
    %28 = vector.broadcast %27 : vector<2x8x1xf32> to vector<2x8x256xf32>
    %29 = arith.mulf %0, %28 : vector<2x8x256xf32>
    %c0_7 = arith.constant 0 : index
    %c0_8 = arith.constant 0 : index
    %c0_9 = arith.constant 0 : index
    %30 = vector.load %arg3[%c0_7, %c0_8, %c0_9] : memref<2x8x256xf32, #tpu.memory_space<vmem>>, vector<2x8x256xf32>
    tpu.vector_store %arg3[%c0_7, %c0_8, %c0_9], %29 {strides = array<i32>} : memref<2x8x256xf32, #tpu.memory_space<vmem>>, vector<2x8x256xf32>,
    return
  }
  func.func @transform_0(%arg0: i32) -> i32 {
    %c0_i32 = arith.constant 0 : i32
    %c0_i32_0 = arith.constant 0 : i32
    return %c0_i32 : i32
  }
  func.func @transform_1(%arg0: i32) -> (i32, i32, i32) {
    %c0_i32 = arith.constant 0 : i32
    %c0_i32_0 = arith.constant 0 : i32
    %c0_i32_1 = arith.constant 0 : i32
    return %arg0, %c0_i32, %c0_i32_0 : i32, i32, i32
  }
  func.func @transform_2(%arg0: i32) -> (i32, i32, i32) {
    %c0_i32 = arith.constant 0 : i32
    %c0_i32_0 = arith.constant 0 : i32
    %c0_i32_1 = arith.constant 0 : i32
    return %arg0, %c0_i32, %c0_i32_0 : i32, i32, i32
  }
}

</mosaic_0001>

<bundles_post_ra>
// kernel: tpu_custom_call.1
= control target key start
LH: loop header
LB: loop body
LE: loop exit
PB: predicated region body
PF: predicated region fallthrough
CT: control target
= control target key end

     0   :  { %7 = vsyncpa [#allocation5], 0  ;;  %s326_s0 = inlined_call_operand.hbm [shape: f32[3], index: 0, kind: input, shape index: {}]   ;;  %s327_s1 = inlined_call_operand.hbm [shape: f32[2,8,256], index: 1, kind: input, shape index: {}]   ;;  %s328_s2 = inlined_call_operand.hbm [shape: f32[2,8,256], index: 2, kind: output, shape index: {}]  }
   0x1   :  { %8 = vsyncpa [#allocation3], 0 }
   0x2   :  { %9 = vsyncpa [#allocation4], 0  ;;  %s176_s11 = scalar_lea.hbm %s326_s0, 16 }
   0x3   :  { %p177_p0 = scmp.ne.s32.totalorder %s326_s0, %s176_s11  ;;  %p180_p1 = scmp.lt.u32.totalorder %s176_s11, %s326_s0 }
   0x5   :  { %p182_p2 = pnand %p180_p1, %p177_p0 }
   0x7   :  { %185 = shalt.err (!%p182_p2)
}
   0x8   :  { %s236_s16 = smov [#allocation2]   ;;  %s237_s19 = smov [#allocation6]  }
   0x9   :  { %17 = dma.hbm_to_smem %s326_s0, 16, %s236_s16, [#allocation5]  }
   0xa   :  { %s23_s20 = sshll.u32 %s237_s19, 4  ;;  %s186_s23 = scalar_lea.hbm %s327_s1, 512  ;;  %s24_s20 = int_to_ptr.vmem [resolvable:$true] %s23_s20 }
   0xb   :  { %p187_p3 = scmp.ne.s32.totalorder %s327_s1, %s186_s23  ;;  %p190_p4 = scmp.lt.u32.totalorder %s186_s23, %s327_s1 }
   0xd   :  { %p192_p5 = pnand %p190_p4, %p187_p3 }
   0xf   :  { %195 = shalt.err (!%p192_p5)
}
  0x10   :  { %s196_s28 = scalar_lea.vmem %s24_s20, 512  ;;  %p201_p7 = scmp.lt.s32.totalorder %s24_s20, %s24_s20 }
  0x11   :  { %p197_p6 = scmp.ne.s32.totalorder %s24_s20, %s196_s28  ;;  %p202_p8 = scmp.lt.s32.totalorder %s196_s28, %s196_s28 }
  0x13   :  { %p203_p9 = por %p202_p8, %p201_p7 }
  0x15   :  { %p204_p10 = pnand %p203_p9, %p197_p6 }
  0x17   :  { %207 = shalt.err (!%p204_p10)
}
  0x18   :  { %s238_s0 = smov 256   ;;  %s239_s29 = smov 16  }
  0x19   :  { %29 = dma.hbm_to_vmem [thread:$0]  %s327_s1, 512, %s24_s20, [#allocation3], %s238_s0, %s238_s0, %s239_s29  }
  0x1a   :  { %230 = dma.done.wait [#allocation5], 16  }
  0x1b   :  { %231 = vsyncadd [#allocation5], 4294967280 }
  0x1c   :  { %232 = dma.done.wait [#allocation3], 512  }
  0x1d   :  { %233 = vsyncadd [#allocation3], 4294966784 }
  0x1e   :  { %36 = sfence }
  0x1f   :  { %v284_v0 = vld [vmem:[#allocation6] sm:$0xff]  ;;  %v286_v1 = vld [vmem:[#allocation6 + $0x8] sm:$0xff]  ;;  %v288_v2 = vld [vmem:[#allocation6 + $0x10] sm:$0xff]  ;;  %v240_v6 = vmov 0   ;;  %s156_s1 = sld [smem:[#allocation2 + $0x1]]  ;;  %s157_s4 = sld [smem:[#allocation2 + $0x2]] }
  0x20   :  { %v41_v3 = vadd.f32 %v286_v1, %v284_v0  ;;  %v292_v4 = vld [vmem:[#allocation6 + $0x18] sm:$0xff]  ;;  %166 = vset.pattern.permute.xlu1 %v240_v6  ;;  %167 = vset.pattern.permute.xlu0 %v240_v6  ;;  %s296_s5 = sld [smem:[#allocation2]]  ;;  %vm55_vm0 = vcmask 1040384   ;;  %vm76_vm1 = vcmask 1046528   ;;  %vm97_vm2 = vcmask 1045504   ;;  %s241_s6 = smov [#allocation7]  }
  0x21   :  { %v44_v5 = vadd.f32 %v292_v4, %v288_v2  ;;  %s143_s7 = sshll.u32 %s241_s6, 4  ;;  %s144_s7 = int_to_ptr.vmem [resolvable:$true] %s143_s7 }
  0x22   :  { %42 = vadd.xlane.f32.xlu0 %v41_v3  ;;  %s208_s8 = scalar_lea.vmem %s144_s7, 512  ;;  %p213_p12 = scmp.lt.s32.totalorder %s144_s7, %s144_s7 }
  0x23   :  { %p209_p11 = scmp.ne.s32.totalorder %s144_s7, %s208_s8  ;;  %p214_p13 = scmp.lt.s32.totalorder %s208_s8, %s208_s8 }
  0x25   :  { %v67_v9 = vstv %s156_s1  ;;  %v88_v10 = vstv %s157_s4  ;;  %p215_p0 = por %p214_p13, %p213_p12 }
  0x26   :  { %45 = vadd.xlane.f32.xlu0 %v44_v5  ;;  %v61_v16 = vstv %s296_s5 }
  0x27   :  { %p216_p1 = pnand %p215_p0, %p209_p11 }
  0xaf   :  { %v43_v7 = vpop.xlane.xlu0 %42 }
  0xb0   :  { %v47_v8 = vmul.f32 0.00390625, %v43_v7 }
  0xb2   :  { %v51_v11 = vrot.slane %v47_v8, 7 }
  0xb3   :  { %v46_v12 = vpop.xlane.xlu0 %45 }
  0xb4   :  { %v56_v13 = vsel %vm55_vm0, 0.0, %v51_v11  ;;  %v58_v14 = vsel %vm55_vm0, %v51_v11, 0.0  ;;  %v48_v15 = vmul.f32 0.00390625, %v46_v12 }
  0xb5   :  { %v68_v17 = vmul.f32 %v67_v9, %v56_v13  ;;  %v69_v18 = vmul.f32 %v67_v9, %v58_v14  ;;  %v89_v19 = vmul.f32 %v88_v10, %v56_v13  ;;  %v90_v20 = vmul.f32 %v88_v10, %v58_v14 }
  0xb6   :  { %v52_v21 = vrot.slane %v48_v15, 7  ;;  %v62_v25 = vmul.f32 %v61_v16, %v56_v13 }
  0xb7   :  { %v77_v22 = vrot.slane %v68_v17, 1  ;;  %v78_v23 = vrot.slane %v69_v18, 1  ;;  %v98_v24 = vrot.slane %v89_v19, 2  ;;  %v99_v26 = vrot.slane %v90_v20, 2 }
  0xb8   :  { %v57_v27 = vsel %vm55_vm0, 0.0, %v52_v21  ;;  %v59_v28 = vsel %vm55_vm0, %v52_v21, 0.0 }
  0xb9   :  { %v79_v29 = vsel %vm76_vm1, %v77_v22, %v78_v23  ;;  %v70_v30 = vmul.f32 %v67_v9, %v57_v27  ;;  %v71_v31 = vmul.f32 %v67_v9, %v59_v28  ;;  %v91_v33 = vmul.f32 %v88_v10, %v57_v27 }
  0xba   :  { %v85_v32 = vadd.f32 %v79_v29, %v62_v25  ;;  %v92_v34 = vmul.f32 %v88_v10, %v59_v28  ;;  %v100_v35 = vsel %vm97_vm2, %v98_v24, %v99_v26  ;;  %v63_v39 = vmul.f32 %v61_v16, %v57_v27 }
  0xbb   :  { %v80_v36 = vrot.slane %v70_v30, 1  ;;  %v81_v37 = vrot.slane %v71_v31, 1  ;;  %v101_v40 = vrot.slane %v91_v33, 2 }
  0xbc   :  { %v106_v38 = vadd.f32 %v100_v35, %v85_v32  ;;  %v102_v41 = vrot.slane %v92_v34, 2 }
  0xbd   :  { %v82_v42 = vsel %vm76_vm1, %v80_v36, %v81_v37 }
  0xbe   :  { %v158_v43 = vmul.f32 -1.442695, %v106_v38  ;;  %v86_v44 = vadd.f32 %v82_v42, %v63_v39  ;;  %v103_v45 = vsel %vm97_vm2, %v101_v40, %v102_v41 }
  0xc0   :  { %168 = vpow2.f32 %v158_v43  ;;  %v107_v46 = vadd.f32 %v103_v45, %v86_v44 }
  0xc2   :  { %v159_v47 = vmul.f32 -1.442695, %v107_v46 }
  0xc4   :  { %170 = vpow2.f32 %v159_v47 }
  0xca   :  { %v169_v48 = vpop.eup %168 }
  0xcb   :  { %v114_v49 = vadd.f32 1.0, %v169_v48 }
  0xcd   :  { %172 = vrcp.f32 %v114_v49 }
  0xce   :  { %v171_v50 = vpop.eup %170 }
  0xcf   :  { %v115_v51 = vadd.f32 1.0, %v171_v50 }
  0xd1   :  { %174 = vrcp.f32 %v115_v51 }
  0xd7   :  { %v173_v52 = vpop.eup %172 }
  0xd8   :  { %122 = vperm.xlu1 %166, %v173_v52  }
  0xdb   :  { %v175_v53 = vpop.eup %174 }
  0xdc   :  { %127 = vperm.xlu1 %166, %v175_v53  }
 0x157   :  { %v123_v54 = vpop.permute.xlu1 %122 }
 0x158   :  { %v130_v55 = vmul.f32 %v123_v54, %v284_v0  ;;  %v131_v56 = vmul.f32 %v123_v54, %v286_v1 }
 0x15a   :  { %134 = vst [vmem:[#allocation7] sm:$0xff] %v130_v55  ;;  %135 = vst [vmem:[#allocation7 + $0x8] sm:$0xff] %v131_v56 }
 0x15b   :  { %v128_v57 = vpop.permute.xlu1 %127 }
 0x15c   :  { %v132_v58 = vmul.f32 %v128_v57, %v288_v2  ;;  %v133_v59 = vmul.f32 %v128_v57, %v292_v4 }
 0x15e   :  { %136 = vst [vmem:[#allocation7 + $0x10] sm:$0xff] %v132_v58  ;;  %137 = vst [vmem:[#allocation7 + $0x18] sm:$0xff] %v133_v59 }
 0x15f   :  { %219 = shalt.err (!%p216_p1)
}
 0x160   :  { %s220_s11 = scalar_lea.hbm %s328_s2, 512 }
 0x161   :  { %p221_p2 = scmp.ne.s32.totalorder %s328_s2, %s220_s11  ;;  %p224_p3 = scmp.lt.u32.totalorder %s220_s11, %s328_s2 }
 0x163   :  { %p226_p4 = pnand %p224_p3, %p221_p2 }
 0x165   :  { %229 = shalt.err (!%p226_p4)
}
 0x166   :  { %149 = dma.vmem_to_hbm [thread:$0]  %s144_s7, 512, %s328_s2, [#allocation4], %s238_s0, %s238_s0, %s239_s29  }
 0x167   :  { %234 = dma.done.wait [#allocation4], 512  }
 0x168   :  { %235 = vsyncadd [#allocation4], 4294966784 }
 0x169   :  { %153 = vsyncpa [#allocation3], 1 }
 0x16a   :  { %154 = vsyncpa [#allocation4], 1 }
 0x16b   :  { %155 = vsyncpa [#allocation5], 1 }

</bundles_post_ra>
